<compile_context>
chip_gen: v7x
topology: tpu7x:2x2x1
jax: 0.10.0
libtpu: 0.0.40
codegen_flags: <defaults>
</compile_context>

<pallas_src>
from functools import partial

import jax
import jax.numpy as jnp
from jax.experimental import pallas as pl
from jax.experimental.pallas import tpu as pltpu

O_PAD = 128      # lane-dense padded output width (one full lane tile)
MAX_BT = 4096    # bf16 x tile: 4096*784*2 ~= 6.1 MiB; x2 bufs + f32 out bufs ~= 17 MiB


def mclr_kernel(x_ref, w_ref, b_ref, o_ref):
    # x: (Bt, D) bf16   w: (D, O_PAD) bf16   b: (1, O_PAD) f32   o: (Bt, O_PAD) f32
    logits = jnp.dot(x_ref[...], w_ref[...],
                     preferred_element_type=jnp.float32) + b_ref[...]
    # Numerically stable log_softmax over the padded lane axis.  Padded lanes hold
    # ~-1e30 (zero bf16 weight column + -1e30 bias) so exp() underflows to 0 and they
    # contribute nothing to the max or the logsumexp.
    m = jnp.max(logits, axis=1, keepdims=True)
    shifted = logits - m
    lse = jnp.log(jnp.sum(jnp.exp(shifted), axis=1, keepdims=True))
    o_ref[...] = (shifted - lse).astype(o_ref.dtype)


def prepare_params(weight, bias, o_pad=O_PAD):
    """One-time parameter preparation (call once at init, reuse every forward).

    weight: (output_dim, input_dim) as in nn.Linear.  bias: (output_dim,).
    Returns (w_t_padded (D, o_pad) bf16, b_padded (1, o_pad) f32).
    """
    O, D = weight.shape
    w_t = jnp.zeros((D, o_pad), jnp.bfloat16).at[:, :O].set(weight.T.astype(jnp.bfloat16))
    b_p = jnp.full((1, o_pad), -1e30, jnp.float32).at[0, :O].set(bias.astype(jnp.float32))
    return w_t, b_p


def _round_up(a, m):
    return ((a + m - 1) // m) * m


def _pick_bt(B):
    # Small batch: one full-extent block (always layout-legal, even if B % 8 != 0).
    if B <= 16:
        return B
    # >= 2 tiles so the "parallel" batch axis shards across both TCs on v7x;
    # multiple of 8 sublanes; capped so double-buffers fit the 32 MiB VMEM budget.
    return min(MAX_BT, _round_up(pl.cdiv(B, 2), 8))


@partial(jax.jit, static_argnames=("output_dim", "return_padded"))
def mclr_logistic_forward(x, w_prepared, b_prepared, output_dim=10, return_padded=False):
    """x: (B, ...) with prod(trailing dims) == input_dim.
    w_prepared/b_prepared: outputs of prepare_params().
    Supplying x already as bfloat16 avoids the cast's extra HBM pass at large B."""
    B = x.shape[0]
    D, o_pad = w_prepared.shape

    x2 = x.reshape(B, D)                      # torch.flatten(x, 1)
    if x2.dtype != jnp.bfloat16:
        x2 = x2.astype(jnp.bfloat16)          # halve the dominant x HBM stream

    bt = _pick_bt(B)
    grid = (pl.cdiv(B, bt),)                  # ragged last block handled by Pallas masking

    out = pl.pallas_call(
        mclr_kernel,
        out_shape=jax.ShapeDtypeStruct((B, o_pad), jnp.float32),
        grid_spec=pltpu.PrefetchScalarGridSpec(
            num_scalar_prefetch=0,
            grid=grid,
            in_specs=[
                pl.BlockSpec((bt, D), lambda i: (i, 0)),      # x tile, pipelined over batch
                pl.BlockSpec((D, o_pad), lambda i: (0, 0)),   # weight: VMEM-resident
                pl.BlockSpec((1, o_pad), lambda i: (0, 0)),   # bias: VMEM-resident
            ],
            out_specs=pl.BlockSpec((bt, o_pad), lambda i: (i, 0)),
        ),
        compiler_params=pltpu.CompilerParams(
            dimension_semantics=("parallel",),   # shards batch tiles across TCs on v7x
            vmem_limit_bytes=32 * 1024 * 1024,   # above v5e's 16 MiB default scoped limit
        ),
    )(x2, w_prepared, b_prepared)

    if return_padded:
        # (B, 128): columns >= output_dim hold ~-1e30; consumer must ignore them.
        return out
    return out[:, :output_dim]


if __name__ == "__main__":
    input_dim, output_dim = 784, 10
    batch = 8

    key = jax.random.PRNGKey(0)
    kx, kw, kb = jax.random.split(key, 3)

    # Deterministic synthetic parameters (same shapes as nn.Linear(784, 10)).
    weight = jax.random.normal(kw, (output_dim, input_dim), jnp.float32) * 0.05
    bias = jax.random.normal(kb, (output_dim,), jnp.float32) * 0.05

    # Input shaped like MNIST images (B, 1, 28, 28) -> flattens to (B, 784).
    x = jax.random.normal(kx, (batch, 1, 28, 28), jnp.float32)

    # One-time parameter prep (transpose + lane padding + bf16 cast), reused per forward.
    w_prep, b_prep = prepare_params(weight, bias)

    out = mclr_logistic_forward(x, w_prep, b_prep, output_dim=output_dim)
    out = jax.block_until_ready(out)

    assert out.shape == (batch, output_dim)
    assert out.dtype == jnp.float32

    # Reference 1: full-f32 module semantics (tolerance loosened for the bf16 inputs).
    ref_f32 = jax.nn.log_softmax(x.reshape(batch, -1) @ weight.T + bias, axis=1)
    assert jnp.allclose(out, ref_f32, atol=5e-2, rtol=5e-2), \
        float(jnp.max(jnp.abs(out - ref_f32)))

    # Reference 2: same bf16-cast inputs the kernel sees (tight check of the kernel math).
    x_bf = x.reshape(batch, -1).astype(jnp.bfloat16).astype(jnp.float32)
    w_bf = weight.astype(jnp.bfloat16).astype(jnp.float32)
    ref_bf = jax.nn.log_softmax(x_bf @ w_bf.T + bias, axis=1)
    assert jnp.allclose(out, ref_bf, atol=1e-3, rtol=1e-3), \
        float(jnp.max(jnp.abs(out - ref_bf)))

    print("KERNEL_OK")
</pallas_src>

<mosaic_0001>
module attributes {stable_mosaic.version = 11 : i64} {
  func.func @mclr_kernel(%arg0: i32, %arg1: memref<8x784xbf16, #tpu.memory_space<vmem>>, %arg2: memref<784x128xbf16, #tpu.memory_space<vmem>>, %arg3: memref<1x128xf32, #tpu.memory_space<vmem>>, %arg4: memref<8x128xf32, #tpu.memory_space<vmem>>) attributes {dimension_semantics = [#tpu.dimension_semantics<parallel>], iteration_bounds = array<i64: 1>, scalar_prefetch = 0 : i64, scratch_operands = 0 : i64, tpu.core_type = #tpu.core_type<tc>, window_params = [{transform_indices = @transform_0, window_bounds = array<i64: 8, 784>}, {pipeline_mode = #tpu.pipeline_mode<synchronous>, transform_indices = @transform_1, window_bounds = array<i64: 784, 128>}, {pipeline_mode = #tpu.pipeline_mode<synchronous>, transform_indices = @transform_2, window_bounds = array<i64: 1, 128>}, {transform_indices = @transform_3, window_bounds = array<i64: 8, 128>}]} {
    %c0 = arith.constant 0 : index
    %c0_0 = arith.constant 0 : index
    %0 = vector.load %arg1[%c0, %c0_0] : memref<8x784xbf16, #tpu.memory_space<vmem>>, vector<8x784xbf16>
    %c0_1 = arith.constant 0 : index
    %c0_2 = arith.constant 0 : index
    %1 = vector.load %arg2[%c0_1, %c0_2] : memref<784x128xbf16, #tpu.memory_space<vmem>>, vector<784x128xbf16>
    %cst = arith.constant dense<0.000000e+00> : vector<8x128xf32>
    %2 = tpu.matmul %0, %1, %cst {dimension_numbers = #tpu.dot_dimension_numbers<[1], [0], [0], [1], [0, 0, 1, 1], [], []>} : vector<8x784xbf16>, vector<784x128xbf16>, vector<8x128xf32> -> vector<8x128xf32>
    %c0_3 = arith.constant 0 : index
    %c0_4 = arith.constant 0 : index
    %3 = vector.load %arg3[%c0_3, %c0_4] : memref<1x128xf32, #tpu.memory_space<vmem>>, vector<1x128xf32>
    %4 = vector.broadcast %3 : vector<1x128xf32> to vector<8x128xf32>
    %5 = arith.addf %2, %4 : vector<8x128xf32>
    %cst_5 = arith.constant dense<0xFF800000> : vector<8xf32>
    %6 = vector.multi_reduction <maximumf>, %5, %cst_5 [1] : vector<8x128xf32> to vector<8xf32>
    %7 = vector.shape_cast %6 : vector<8xf32> to vector<8x1xf32>
    %8 = vector.broadcast %7 : vector<8x1xf32> to vector<8x128xf32>
    %9 = arith.subf %5, %8 : vector<8x128xf32>
    %10 = math.exp %9 : vector<8x128xf32>
    %cst_6 = arith.constant dense<0.000000e+00> : vector<8xf32>
    %11 = vector.multi_reduction <add>, %10, %cst_6 [1] : vector<8x128xf32> to vector<8xf32>
    %12 = vector.shape_cast %11 : vector<8xf32> to vector<8x1xf32>
    %13 = math.log %12 : vector<8x1xf32>
    %14 = vector.broadcast %13 : vector<8x1xf32> to vector<8x128xf32>
    %15 = arith.subf %9, %14 : vector<8x128xf32>
    %c0_7 = arith.constant 0 : index
    %c0_8 = arith.constant 0 : index
    %16 = vector.load %arg4[%c0_7, %c0_8] : memref<8x128xf32, #tpu.memory_space<vmem>>, vector<8x128xf32>
    tpu.vector_store %arg4[%c0_7, %c0_8], %15 {strides = array<i32>} : memref<8x128xf32, #tpu.memory_space<vmem>>, vector<8x128xf32>,
    return
  }
  func.func @transform_0(%arg0: i32) -> (i32, i32) {
    %c0_i32 = arith.constant 0 : i32
    %c0_i32_0 = arith.constant 0 : i32
    return %arg0, %c0_i32 : i32, i32
  }
  func.func @transform_1(%arg0: i32) -> (i32, i32) {
    %c0_i32 = arith.constant 0 : i32
    %c0_i32_0 = arith.constant 0 : i32
    %c0_i32_1 = arith.constant 0 : i32
    return %c0_i32, %c0_i32_0 : i32, i32
  }
  func.func @transform_2(%arg0: i32) -> (i32, i32) {
    %c0_i32 = arith.constant 0 : i32
    %c0_i32_0 = arith.constant 0 : i32
    %c0_i32_1 = arith.constant 0 : i32
    return %c0_i32, %c0_i32_0 : i32, i32
  }
  func.func @transform_3(%arg0: i32) -> (i32, i32) {
    %c0_i32 = arith.constant 0 : i32
    %c0_i32_0 = arith.constant 0 : i32
    return %arg0, %c0_i32 : i32, i32
  }
}

</mosaic_0001>

<bundles_post_ra>
// kernel: mclr_logistic_forward.1
= control target key start
LH: loop header
LB: loop body
LE: loop exit
PB: predicated region body
PF: predicated region fallthrough
CT: control target
= control target key end

     0   :  { %v851_v43 = vmov 0.0   ;;  %vm852_vm0 = vmmov 0   ;;  %s1048_s0 = inlined_call_operand.vmem [shape: bf16[8,784], index: 0, kind: input, shape index: {}]   ;;  %s1049_s1 = inlined_call_operand.vmem [shape: bf16[784,128], index: 1, kind: input, shape index: {}]   ;;  %s1050_s2 = inlined_call_operand.vmem [shape: f32[1,128], index: 2, kind: input, shape index: {}]   ;;  %s1051_s3 = inlined_call_operand.hbm [shape: f32[8,128], index: 3, kind: output, shape index: {}]  }
   0x1   :  { %v767_v0 = vld [vmem:[%s1049_s1 + $0x40] sm:$0xff]   ;;  %v771_v4 = vld [vmem:[%s1049_s1 + $0x48] sm:$0xff]   ;;  %v775_v8 = vld [vmem:[%s1049_s1 + $0x50] sm:$0xff]  }
   0x2   :  { %v768_v1 = vld [vmem:[%s1049_s1] sm:$0xff]   ;;  %690 = vmatprep.subr.bf16.mxu0 %v767_v0  ;;  %v772_v5 = vld [vmem:[%s1049_s1 + $0x8] sm:$0xff]   ;;  %v776_v9 = vld [vmem:[%s1049_s1 + $0x10] sm:$0xff]  }
   0x3   :  { %v769_v2 = vld [vmem:[%s1049_s1 + $0xc0] sm:$0xff]   ;;  %691 = vmatpush3.bf16.msra.mxu0 %v768_v1  ;;  %v773_v6 = vld [vmem:[%s1049_s1 + $0xc8] sm:$0xff]   ;;  %v777_v10 = vld [vmem:[%s1049_s1 + $0xd0] sm:$0xff]  }
   0x4   :  { %v770_v3 = vld [vmem:[%s1049_s1 + $0x80] sm:$0xff]   ;;  %712 = vmatprep.subr.bf16.mxu1 %v769_v2  ;;  %692 = vmatprep.subr.bf16.mxu0 %v771_v4  ;;  %v774_v7 = vld [vmem:[%s1049_s1 + $0x88] sm:$0xff]   ;;  %v778_v11 = vld [vmem:[%s1049_s1 + $0x90] sm:$0xff]  }
   0x5   :  { %713 = vmatpush3.bf16.msra.mxu1 %v770_v3  ;;  %v779_v12 = vld [vmem:[%s1049_s1 + $0x58] sm:$0xff]   ;;  %v783_v16 = vld [vmem:[%s1049_s1 + $0x60] sm:$0xff]   ;;  %v787_v20 = vld [vmem:[%s1049_s1 + $0x68] sm:$0xff]  }
   0x6   :  { %714 = vmatprep.subr.bf16.mxu1 %v773_v6  ;;  %v780_v13 = vld [vmem:[%s1049_s1 + $0x18] sm:$0xff]   ;;  %v784_v17 = vld [vmem:[%s1049_s1 + $0x20] sm:$0xff]   ;;  %v788_v21 = vld [vmem:[%s1049_s1 + $0x28] sm:$0xff]  }
   0x7   :  { %693 = vmatpush3.bf16.msra.mxu0 %v772_v5  ;;  %v781_v14 = vld [vmem:[%s1049_s1 + $0xd8] sm:$0xff]   ;;  %v785_v18 = vld [vmem:[%s1049_s1 + $0xe0] sm:$0xff]   ;;  %v789_v22 = vld [vmem:[%s1049_s1 + $0xe8] sm:$0xff]  }
   0x8   :  { %694 = vmatprep.subr.bf16.mxu0 %v775_v8  ;;  %v782_v15 = vld [vmem:[%s1049_s1 + $0x98] sm:$0xff]   ;;  %v786_v19 = vld [vmem:[%s1049_s1 + $0xa0] sm:$0xff]   ;;  %v790_v23 = vld [vmem:[%s1049_s1 + $0xa8] sm:$0xff]  }
   0x9   :  { %715 = vmatpush3.bf16.msra.mxu1 %v774_v7  ;;  %v791_v24 = vld [vmem:[%s1049_s1 + $0x70] sm:$0xff]   ;;  %v795_v28 = vld [vmem:[%s1049_s1 + $0x78] sm:$0xff]   ;;  %v16_v31 = vld [vmem:[%s1048_s0] sm:$0xff] }
   0xa   :  { %716 = vmatprep.subr.bf16.mxu1 %v777_v10  ;;  %v792_v25 = vld [vmem:[%s1049_s1 + $0x30] sm:$0xff]   ;;  %v796_v29 = vld [vmem:[%s1049_s1 + $0x38] sm:$0xff]   ;;  %v633_v32 = vcombine.low %v16_v31, %v16_v31  ;;  %v634_v33 = vcombine.high %v16_v31, %v16_v31  ;;  %v801_v35 = vld [vmem:[%s1049_s1 + $0x140] sm:$0xff]  }
   0xb   :  { %695 = vmatpush3.bf16.msra.mxu0 %v776_v9  ;;  %v793_v26 = vld [vmem:[%s1049_s1 + $0xf0] sm:$0xff]   ;;  %v797_v30 = vld [vmem:[%s1049_s1 + $0xf8] sm:$0xff]   ;;  %v17_v36 = vld [vmem:[%s1048_s0 + $0x8] sm:$0xff] }
   0xc   :  { %696 = vmatprep.subr.bf16.mxu0 %v779_v12  ;;  %v794_v27 = vld [vmem:[%s1049_s1 + $0xb0] sm:$0xff]   ;;  %v800_v34 = vld [vmem:[%s1049_s1 + $0xb8] sm:$0xff]   ;;  %479 = vmatprep.mubr.bf16.mxu0 %v634_v33  ;;  %v635_v37 = vcombine.low %v17_v36, %v17_v36  ;;  %v636_v38 = vcombine.high %v17_v36, %v17_v36  ;;  %v804_v39 = vld [vmem:[%s1049_s1 + $0x100] sm:$0xff]  }
   0xd   :  { %717 = vmatpush3.bf16.msra.mxu1 %v778_v11  ;;  %v805_v40 = vld [vmem:[%s1049_s1 + $0x148] sm:$0xff]   ;;  %v807_v42 = vld [vmem:[%s1049_s1 + $0x150] sm:$0xff]   ;;  %v809_v45 = vld [vmem:[%s1049_s1 + $0x158] sm:$0xff]  }
   0xe   :  { %718 = vmatprep.subr.bf16.mxu1 %v781_v14  ;;  %519 = vmatprep.mubr.bf16.mxu1 %v636_v38  ;;  %v806_v41 = vld [vmem:[%s1049_s1 + $0x108] sm:$0xff]   ;;  %v808_v44 = vld [vmem:[%s1049_s1 + $0x110] sm:$0xff]   ;;  %v810_v46 = vld [vmem:[%s1049_s1 + $0x118] sm:$0xff]  }
   0xf   :  { %697 = vmatpush3.bf16.msra.mxu0 %v780_v13  ;;  %v811_v47 = vld [vmem:[%s1049_s1 + $0x160] sm:$0xff]   ;;  %v813_v49 = vld [vmem:[%s1049_s1 + $0x168] sm:$0xff]   ;;  %v18_v51 = vld [vmem:[%s1048_s0 + $0x10] sm:$0xff] }
  0x10   :  { %698 = vmatprep.subr.bf16.mxu0 %v783_v16  ;;  %v812_v48 = vld [vmem:[%s1049_s1 + $0x120] sm:$0xff]   ;;  %v638_v52 = vcombine.high %v18_v51, %v18_v51  ;;  %v822_v53 = vld [vmem:[%s1048_s0 + $0x18] ss:$0 sps:$4 sm:$0xff]  }
  0x11   :  { %719 = vmatpush3.bf16.msra.mxu1 %v782_v15  ;;  %v819_v50 = vld [vmem:[%s1049_s1 + $0x180] sm:$0xff]  }
  0x12   :  { %720 = vmatprep.subr.bf16.mxu1 %v785_v18 }
  0x13   :  { %699 = vmatpush3.bf16.msra.mxu0 %v784_v17 }
  0x14   :  { %700 = vmatprep.subr.bf16.mxu0 %v787_v20 }
  0x15   :  { %721 = vmatpush3.bf16.msra.mxu1 %v786_v19 }
  0x16   :  { %722 = vmatprep.subr.bf16.mxu1 %v789_v22 }
  0x17   :  { %701 = vmatpush3.bf16.msra.mxu0 %v788_v21 }
  0x18   :  { %702 = vmatprep.subr.bf16.mxu0 %v791_v24 }
  0x19   :  { %723 = vmatpush3.bf16.msra.mxu1 %v790_v23 }
  0x1a   :  { %724 = vmatprep.subr.bf16.mxu1 %v793_v26 }
  0x1b   :  { %703 = vmatpush3.bf16.msra.mxu0 %v792_v25 }
  0x1c   :  { %704 = vmatprep.subr.bf16.mxu0 %v795_v28 }
  0x1d   :  { %725 = vmatpush3.bf16.msra.mxu1 %v794_v27 }
  0x1e   :  { %726 = vmatprep.subr.bf16.mxu1 %v797_v30 }
  0x1f   :  { %705 = vmatpush3.bf16.msra.mxu0 %v796_v29 }
  0x20   :  { %734 = vmatprep.subr.bf16.mxu0 %v801_v35 }
  0x21   :  { %727 = vmatpush3.bf16.msra.mxu1 %v800_v34 }
  0x22   :  { %480 = vmatmul.mubr.bf16.vlgmr.msra.gmra.mrb[0].mxu0 %v633_v32  ;;  %758 = vmatprep.subr.bf16.mxu1 %v851_v43 }
  0x23   :  { %735 = vmatpush3.bf16.msra.mxu0 %v804_v39 }
  0x24   :  { %520 = vmatmul.mubr.bf16.vlgmr.msra.gmra.mrb[0].mxu1 %v635_v37  ;;  %736 = vmatprep.subr.bf16.mxu0 %v805_v40 }
  0x25   :  { %760 = vmatprep.mubr.msk.bf16.mxu1 %vm852_vm0, %v851_v43 }
  0x27   :  { %737 = vmatpush3.bf16.msra.mxu0 %v806_v41 }
  0x28   :  { %738 = vmatprep.subr.bf16.mxu0 %v807_v42 }
  0x2b   :  { %739 = vmatpush3.bf16.msra.mxu0 %v808_v44 }
  0x2c   :  { %740 = vmatprep.subr.bf16.mxu0 %v809_v45 }
  0x2f   :  { %741 = vmatpush3.bf16.msra.mxu0 %v810_v46 }
  0x30   :  { %742 = vmatprep.subr.bf16.mxu0 %v811_v47 }
  0x31   :  { %8 = vsyncpa [#allocation3], 0  ;;  %759 = vmatpush3.bf16.msra.mxu1 %v819_v50  ;;  %vm443_vm1 = vcmask 130048   ;;  %v814_v54 = vld [vmem:[%s1049_s1 + $0x128] sm:$0xff]   ;;  %559 = vmatprep.mubr.bf16.mxu0 %v638_v52  ;;  %v815_v55 = vld [vmem:[%s1049_s1 + $0x170] sm:$0xff]   ;;  %v637_v59 = vcombine.low %v18_v51, %v18_v51 }
  0x32   :  { %v816_v56 = vld [vmem:[%s1049_s1 + $0x130] sm:$0xff]   ;;  %v817_v57 = vld [vmem:[%s1049_s1 + $0x178] sm:$0xff]   ;;  %v632_v61 = vld [vmem:[%s1050_s2] ss:$0 sm:$0xff] }
  0x33   :  { %743 = vmatpush3.bf16.msra.mxu0 %v812_v48  ;;  %v818_v58 = vld [vmem:[%s1049_s1 + $0x138] sm:$0xff]   ;;  %s853_s1 = smov [#allocation2]  }
  0x34   :  { %744 = vmatprep.subr.bf16.mxu0 %v813_v49  ;;  %761 = vmatmul.mubr.msk.bf16.vlgmr.msra.gmra.mrb[4].mxu1 %vm443_vm1, %v822_v53  ;;  %s624_s2 = sshll.u32 %s853_s1, 4  ;;  %s625_s2 = int_to_ptr.vmem [resolvable:$true] %s624_s2 }
  0x35   :  { %s827_s11 = scalar_lea.vmem %s625_s2, 128  ;;  %p832_p1 = scmp.lt.s32.totalorder %s625_s2, %s625_s2 }
  0x36   :  { %p828_p0 = scmp.ne.s32.totalorder %s625_s2, %s827_s11  ;;  %p833_p2 = scmp.lt.s32.totalorder %s827_s11, %s827_s11 }
  0x37   :  { %745 = vmatpush3.bf16.msra.mxu0 %v814_v54 }
  0x38   :  { %746 = vmatprep.subr.bf16.mxu0 %v815_v55  ;;  %p834_p3 = por %p833_p2, %p832_p1 }
  0x3a   :  { %p835_p4 = pnand %p834_p3, %p828_p0 }
  0x3b   :  { %747 = vmatpush3.bf16.msra.mxu0 %v816_v56 }
  0x3c   :  { %748 = vmatprep.subr.bf16.mxu0 %v817_v57 }
  0x3f   :  { %749 = vmatpush3.bf16.msra.mxu0 %v818_v58 }
  0x42   :  { %560 = vmatmul.mubr.bf16.vlgmr.msra.gmra.mrb[4].mxu0 %v637_v59 }
  0xf5   :  { %v706_v60 = vpop.f32.mrb[0].mxu0 }
  0xf6   :  { %v707_v62 = vpop.f32.mrb[1].mxu0 }
  0xf7   :  { %v708_v63 = vadd.f32 %v707_v62, %v706_v60  ;;  %v709_v0 = vpop.f32.mrb[2].mxu0  ;;  %v728_v1 = vpop.f32.mrb[0].mxu1 }
  0xf8   :  { %v710_v2 = vpop.f32.mrb[3].mxu0  ;;  %v729_v3 = vpop.f32.mrb[1].mxu1 }
  0xf9   :  { %v482_v4 = vadd.f32 %v708_v63, %v632_v61  ;;  %v730_v5 = vadd.f32 %v729_v3, %v728_v1  ;;  %v731_v6 = vpop.f32.mrb[2].mxu1 }
  0xfa   :  { %v732_v7 = vpop.f32.mrb[3].mxu1 }
  0xfb   :  { %v522_v8 = vadd.f32 %v730_v5, %v482_v4 }
 0x107   :  { %v601_v9 = vpop.f32.mrb[4].mxu1 }
 0x108   :  { %v762_v10 = vpop.f32.mrb[5].mxu1 }
 0x109   :  { %v604_v11 = vpop.f32.mrb[6].mxu1 }
 0x10a   :  { %v763_v12 = vpop.f32.mrb[7].mxu1 }
 0x115   :  { %v750_v13 = vpop.f32.mrb[4].mxu0 }
 0x116   :  { %v751_v14 = vpop.f32.mrb[5].mxu0 }
 0x117   :  { %v752_v15 = vadd.f32 %v751_v14, %v750_v13  ;;  %v753_v16 = vpop.f32.mrb[6].mxu0 }
 0x118   :  { %v754_v17 = vpop.f32.mrb[7].mxu0 }
 0x119   :  { %v562_v18 = vadd.f32 %v752_v15, %v522_v8 }
 0x11b   :  { %v602_v19 = vadd.f32 %v601_v9, %v562_v18 }
 0x11d   :  { %607 = vmax.xlane.f32.xlu0 %v602_v19 }
 0x1aa   :  { %v608_v20 = vpop.xlane.xlu0 %607 }
 0x1ab   :  { %v609_v21 = vsub.f32 %v602_v19, %v608_v20 }
 0x1ad   :  { %v610_v22 = vmul.f32 1.442695, %v609_v21 }
 0x1af   :  { %823 = vpow2.f32 %v610_v22 }
 0x1b9   :  { %v824_v23 = vpop.eup %823 }
 0x1ba   :  { %612 = vadd.xlane.f32.xlu0 %v824_v23 }
 0x247   :  { %v613_v24 = vpop.xlane.xlu0 %612 }
 0x248   :  { %825 = vlog2.f32 %v613_v24 }
 0x252   :  { %v826_v25 = vpop.eup %825 }
 0x253   :  { %v615_v26 = vmul.f32 0.6931472, %v826_v25 }
 0x255   :  { %v616_v27 = vsub.f32 %v609_v21, %v615_v26 }
 0x257   :  { %617 = vst [vmem:[#allocation2] sm:$0xff] %v616_v27 }
 0x258   :  { %838 = shalt.err (!%p835_p4)
}
 0x259   :  { %s839_s14 = scalar_lea.hbm %s1051_s3, 128 }
 0x25a   :  { %p840_p5 = scmp.ne.s32.totalorder %s1051_s3, %s839_s14  ;;  %p843_p6 = scmp.lt.u32.totalorder %s839_s14, %s1051_s3 }
 0x25c   :  { %p845_p7 = pnand %p843_p6, %p840_p5 }
 0x25e   :  { %848 = shalt.err (!%p845_p7)
}
 0x25f   :  { %627 = dma.vmem_to_hbm [thread:$0]  %s625_s2, 128, %s1051_s3, [#allocation3]  }
 0x260   :  { %849 = dma.done.wait [#allocation3], 128  }
 0x261   :  { %850 = vsyncadd [#allocation3], 4294967168 }
 0x262   :  { %631 = vsyncpa [#allocation3], 1 }

</bundles_post_ra>
